<compile_context>
chip_gen: v7x
topology: tpu7x:2x2x1
jax: 0.10.0
libtpu: 0.0.40
codegen_flags: <defaults>
</compile_context>

<pallas_src>
import jax
import jax.numpy as jnp
from jax.experimental import pallas as pl
from jax.experimental.pallas import tpu as pltpu


def ef_cnn_kernel(tx_ref, au_ref, vi_ref, w_ref, bc_ref, tapmask_ref, pool_ref,
                  o_ref, xf_ref):
    # Per grid step (all refs 2-D, R = batch_tile * T flattened rows):
    #   tx_ref      (R, Dt)   text features
    #   au_ref      (R, Da)   audio features
    #   vi_ref      (R, Dv)   video features
    #   w_ref       (D, K*H)  conv weight, tap-major along columns
    #   bc_ref      (1, H)    conv bias
    #   tapmask_ref (R, K)    1.0 where tap k stays inside the same sequence
    #   pool_ref    (BT, R)   mean-pool matrix (1/T on each sequence's rows)
    #   o_ref       (BT, H)   pooled hidden activations (lane-dense output)
    #   xf_ref      (R, D)    VMEM scratch: early-fused features
    R, D = xf_ref.shape
    KH = w_ref.shape[1]
    H = bc_ref.shape[1]
    K = KH // H
    pad = (K - 1) // 2
    Dt = tx_ref.shape[1]
    Da = au_ref.shape[1]

    # --- early fusion inside the kernel: concat modalities along the feature axis.
    xf_ref[:, 0:Dt] = tx_ref[...]
    xf_ref[:, Dt:Dt + Da] = au_ref[...]
    xf_ref[:, Dt + Da:D] = vi_ref[...]

    # --- Conv1d as ONE wide MXU matmul: every tap's output lives in its own
    # H-wide column block of y.
    y = jnp.dot(xf_ref[...], w_ref[...], preferred_element_type=jnp.float32)  # (R, K*H)

    # --- combine the K taps: shift tap-k columns by (k - pad) rows (XLU roll)
    # and zero rows whose source time index falls outside the sequence
    # ('same' zero padding, also prevents mixing across batch rows).
    acc = jnp.zeros((R, H), jnp.float32)
    for k in range(K):                      # K is a small static constant
        yk = y[:, k * H:(k + 1) * H]
        off = k - pad
        if off != 0:
            yk = pltpu.roll(yk, shift=(-off) % R, axis=0)
        acc = acc + yk * tapmask_ref[:, k:k + 1]

    acc = jnp.maximum(acc + bc_ref[...], 0.0)          # bias + ReLU (f32 VPU)

    # --- mean-pool over time as a tiny matmul (keeps everything 2-D, no reshapes).
    o_ref[...] = jnp.dot(pool_ref[...], acc,
                         preferred_element_type=jnp.float32).astype(o_ref.dtype)


def ef_cnn_forward(text_x, audio_x, video_x, params, batch_tile=None):
    """text/audio/video: [B, T, D_m] float32. Returns [B, 1] float32."""
    wc, bc, wo, bo = params            # wc: (D, K*H) wide conv weight
    B, T, Dt = text_x.shape
    Da = audio_x.shape[2]
    Dv = video_x.shape[2]
    D = Dt + Da + Dv
    KH = wc.shape[1]
    H = bc.shape[1]
    K = KH // H
    assert K % 2 == 1, "'same' conv path assumes an odd kernel size"
    pad = (K - 1) // 2

    BT = B if batch_tile is None else batch_tile
    assert B % BT == 0, "batch must be divisible by the batch tile"
    R = BT * T                         # rows per grid step (batch*time fused)

    # Flatten (batch, time) -> rows; layout-only reshapes, free in XLA.
    tx2 = text_x.reshape(B * T, Dt)
    au2 = audio_x.reshape(B * T, Da)
    vi2 = video_x.reshape(B * T, Dv)

    # Tiny static aux tensors (identical for every batch tile).
    t_idx = jnp.arange(R, dtype=jnp.int32) % T
    offs = jnp.arange(K, dtype=jnp.int32) - pad
    src_t = t_idx[:, None] + offs[None, :]
    tapmask = ((src_t >= 0) & (src_t < T)).astype(jnp.float32)          # (R, K)
    pool = (jnp.arange(BT, dtype=jnp.int32)[:, None] ==
            (jnp.arange(R, dtype=jnp.int32)[None, :] // T)
            ).astype(jnp.float32) / T                                    # (BT, R)

    flops = 2 * B * T * D * K * H + 2 * B * T * H
    bytes_accessed = 4 * (B * T * D + B * H + D * K * H + H)

    pooled = pl.pallas_call(
        ef_cnn_kernel,
        out_shape=jax.ShapeDtypeStruct((B, H), jnp.float32),
        grid_spec=pltpu.PrefetchScalarGridSpec(
            num_scalar_prefetch=0,
            grid=(B // BT,),
            in_specs=[
                pl.BlockSpec((R, Dt), lambda i: (i, 0)),
                pl.BlockSpec((R, Da), lambda i: (i, 0)),
                pl.BlockSpec((R, Dv), lambda i: (i, 0)),
                pl.BlockSpec((D, KH), lambda i: (0, 0)),
                pl.BlockSpec((1, H), lambda i: (0, 0)),
                pl.BlockSpec((R, K), lambda i: (0, 0)),
                pl.BlockSpec((BT, R), lambda i: (0, 0)),
            ],
            # Disjoint per-step output blocks -> the batch axis can be sharded
            # across TensorCores on v7x.
            out_specs=pl.BlockSpec((BT, H), lambda i: (i, 0)),
            scratch_shapes=[pltpu.VMEM((R, D), jnp.float32)],
        ),
        compiler_params=pltpu.CompilerParams(
            dimension_semantics=("parallel",)),
        cost_estimate=pl.CostEstimate(
            flops=flops, transcendentals=0, bytes_accessed=bytes_accessed),
    )(tx2, au2, vi2, wc, bc, tapmask, pool)

    # Tiny Linear(H -> 1) head kept in the wrapper so the kernel's store stays
    # lane-dense instead of a masked 1-lane store.
    return pooled @ wo + bo


def ef_cnn_reference(text_x, audio_x, video_x, params):
    wc, bc, wo, bo = params
    H = bc.shape[1]
    K = wc.shape[1] // H
    pad = (K - 1) // 2
    x = jnp.concatenate([text_x, audio_x, video_x], axis=-1)
    xp = jnp.pad(x, ((0, 0), (pad, pad), (0, 0)))
    T = x.shape[1]
    acc = sum(jnp.einsum("btd,dh->bth", xp[:, k:k + T, :], wc[:, k * H:(k + 1) * H])
              for k in range(K))
    acc = jnp.maximum(acc + bc[None, :, :], 0.0)
    pooled = jnp.mean(acc, axis=1)
    return pooled @ wo + bo


def make_params(key, d_in, hidden, ksize):
    k1, k2, k3, k4 = jax.random.split(key, 4)
    # PyTorch-style shapes, then rearranged for the fused kernel matmul.
    wconv = jax.random.normal(k1, (hidden, d_in, ksize), jnp.float32) * 0.05  # Conv1d (H, D, K)
    bconv = jax.random.normal(k2, (hidden,), jnp.float32) * 0.05
    wout = jax.random.normal(k3, (1, hidden), jnp.float32) * 0.05             # Linear (1, H)
    bout = jax.random.normal(k4, (1,), jnp.float32) * 0.05
    # Wide conv weight: w_wide[d, k*H + h] = wconv[h, d, k]
    wc = jnp.transpose(wconv, (1, 2, 0)).reshape(d_in, ksize * hidden)        # (D, K*H)
    bc = bconv.reshape(1, hidden)                                             # (1, H)
    wo = wout.T                                                               # (H, 1)
    bo = bout.reshape(1, 1)                                                   # (1, 1)
    return wc, bc, wo, bo


if __name__ == "__main__":
    key = jax.random.PRNGKey(0)
    kt, ka, kv, kp = jax.random.split(key, 4)

    B, T = 2, 8
    Dt, Da, Dv = 16, 8, 8          # per-modality feature dims
    H, K = 32, 3                   # conv hidden channels, kernel size

    text_x = jax.random.normal(kt, (B, T, Dt), jnp.float32)
    audio_x = jax.random.normal(ka, (B, T, Da), jnp.float32)
    video_x = jax.random.normal(kv, (B, T, Dv), jnp.float32)

    params = make_params(kp, Dt + Da + Dv, H, K)

    out = ef_cnn_forward(text_x, audio_x, video_x, params)
    out = jax.block_until_ready(out)

    ref = ef_cnn_reference(text_x, audio_x, video_x, params)
    assert out.shape == (B, 1) and out.dtype == jnp.float32
    assert jnp.allclose(out, ref, atol=1e-3, rtol=1e-3), (out, ref)

    print("KERNEL_OK")
</pallas_src>

<mosaic_0001>
module attributes {stable_mosaic.version = 11 : i64} {
  func.func @ef_cnn_kernel(%arg0: i32, %arg1: memref<16x16xf32, #tpu.memory_space<vmem>>, %arg2: memref<16x8xf32, #tpu.memory_space<vmem>>, %arg3: memref<16x8xf32, #tpu.memory_space<vmem>>, %arg4: memref<32x96xf32, #tpu.memory_space<vmem>>, %arg5: memref<1x32xf32, #tpu.memory_space<vmem>>, %arg6: memref<16x3xf32, #tpu.memory_space<vmem>>, %arg7: memref<2x16xf32, #tpu.memory_space<vmem>>, %arg8: memref<2x32xf32, #tpu.memory_space<vmem>>, %arg9: memref<16x32xf32, #tpu.memory_space<vmem>>) attributes {dimension_semantics = [#tpu.dimension_semantics<parallel>], iteration_bounds = array<i64: 1>, scalar_prefetch = 0 : i64, scratch_operands = 1 : i64, tpu.core_type = #tpu.core_type<tc>, window_params = [{transform_indices = @transform_0, window_bounds = array<i64: 16, 16>}, {transform_indices = @transform_1, window_bounds = array<i64: 16, 8>}, {transform_indices = @transform_2, window_bounds = array<i64: 16, 8>}, {pipeline_mode = #tpu.pipeline_mode<synchronous>, transform_indices = @transform_3, window_bounds = array<i64: 32, 96>}, {pipeline_mode = #tpu.pipeline_mode<synchronous>, transform_indices = @transform_4, window_bounds = array<i64: 1, 32>}, {pipeline_mode = #tpu.pipeline_mode<synchronous>, transform_indices = @transform_5, window_bounds = array<i64: 16, 3>}, {pipeline_mode = #tpu.pipeline_mode<synchronous>, transform_indices = @transform_6, window_bounds = array<i64: 2, 16>}, {transform_indices = @transform_7, window_bounds = array<i64: 2, 32>}]} {
    %c0 = arith.constant 0 : index
    %c0_0 = arith.constant 0 : index
    %0 = vector.load %arg1[%c0, %c0_0] : memref<16x16xf32, #tpu.memory_space<vmem>>, vector<16x16xf32>
    %c0_1 = arith.constant 0 : index
    %c0_2 = arith.constant 0 : index
    %1 = vector.load %arg9[%c0_1, %c0_2] : memref<16x32xf32, #tpu.memory_space<vmem>>, vector<16x16xf32>
    tpu.vector_store %arg9[%c0_1, %c0_2], %0 {strides = array<i32>} : memref<16x32xf32, #tpu.memory_space<vmem>>, vector<16x16xf32>,
    %c0_3 = arith.constant 0 : index
    %c0_4 = arith.constant 0 : index
    %2 = vector.load %arg2[%c0_3, %c0_4] : memref<16x8xf32, #tpu.memory_space<vmem>>, vector<16x8xf32>
    %c0_5 = arith.constant 0 : index
    %c16 = arith.constant 16 : index
    %3 = vector.load %arg9[%c0_5, %c16] : memref<16x32xf32, #tpu.memory_space<vmem>>, vector<16x8xf32>
    tpu.vector_store %arg9[%c0_5, %c16], %2 {strides = array<i32>} : memref<16x32xf32, #tpu.memory_space<vmem>>, vector<16x8xf32>,
    %c0_6 = arith.constant 0 : index
    %c0_7 = arith.constant 0 : index
    %4 = vector.load %arg3[%c0_6, %c0_7] : memref<16x8xf32, #tpu.memory_space<vmem>>, vector<16x8xf32>
    %c0_8 = arith.constant 0 : index
    %c24 = arith.constant 24 : index
    %5 = vector.load %arg9[%c0_8, %c24] : memref<16x32xf32, #tpu.memory_space<vmem>>, vector<16x8xf32>
    tpu.vector_store %arg9[%c0_8, %c24], %4 {strides = array<i32>} : memref<16x32xf32, #tpu.memory_space<vmem>>, vector<16x8xf32>,
    %c0_9 = arith.constant 0 : index
    %c0_10 = arith.constant 0 : index
    %6 = vector.load %arg9[%c0_9, %c0_10] : memref<16x32xf32, #tpu.memory_space<vmem>>, vector<16x32xf32>
    %c0_11 = arith.constant 0 : index
    %c0_12 = arith.constant 0 : index
    %7 = vector.load %arg4[%c0_11, %c0_12] : memref<32x96xf32, #tpu.memory_space<vmem>>, vector<32x96xf32>
    %cst = arith.constant dense<0.000000e+00> : vector<16x96xf32>
    %8 = tpu.matmul %6, %7, %cst {dimension_numbers = #tpu.dot_dimension_numbers<[1], [0], [0], [1], [0, 0, 1, 1], [], []>} : vector<16x32xf32>, vector<32x96xf32>, vector<16x96xf32> -> vector<16x96xf32>
    %cst_13 = arith.constant 0.000000e+00 : f32
    %9 = vector.broadcast %cst_13 : f32 to vector<16x32xf32>
    %10 = vector.extract_strided_slice %8 {offsets = [0, 0], sizes = [16, 32], strides = [1, 1]} : vector<16x96xf32> to vector<16x32xf32>
    %c1_i32 = arith.constant 1 : i32
    %11 = tpu.dynamic_rotate %10 by %c1_i32 dim 0 : vector<16x32xf32>, i32 -> vector<16x32xf32>
    %c0_14 = arith.constant 0 : index
    %c0_15 = arith.constant 0 : index
    %12 = vector.load %arg6[%c0_14, %c0_15] : memref<16x3xf32, #tpu.memory_space<vmem>>, vector<16x1xf32>
    %13 = vector.broadcast %12 : vector<16x1xf32> to vector<16x32xf32>
    %14 = arith.mulf %11, %13 : vector<16x32xf32>
    %15 = arith.addf %9, %14 : vector<16x32xf32>
    %16 = vector.extract_strided_slice %8 {offsets = [0, 32], sizes = [16, 32], strides = [1, 1]} : vector<16x96xf32> to vector<16x32xf32>
    %c0_16 = arith.constant 0 : index
    %c1 = arith.constant 1 : index
    %17 = vector.load %arg6[%c0_16, %c1] : memref<16x3xf32, #tpu.memory_space<vmem>>, vector<16x1xf32>
    %18 = vector.broadcast %17 : vector<16x1xf32> to vector<16x32xf32>
    %19 = arith.mulf %16, %18 : vector<16x32xf32>
    %20 = arith.addf %15, %19 : vector<16x32xf32>
    %21 = vector.extract_strided_slice %8 {offsets = [0, 64], sizes = [16, 32], strides = [1, 1]} : vector<16x96xf32> to vector<16x32xf32>
    %c15_i32 = arith.constant 15 : i32
    %22 = tpu.dynamic_rotate %21 by %c15_i32 dim 0 : vector<16x32xf32>, i32 -> vector<16x32xf32>
    %c0_17 = arith.constant 0 : index
    %c2 = arith.constant 2 : index
    %23 = vector.load %arg6[%c0_17, %c2] : memref<16x3xf32, #tpu.memory_space<vmem>>, vector<16x1xf32>
    %24 = vector.broadcast %23 : vector<16x1xf32> to vector<16x32xf32>
    %25 = arith.mulf %22, %24 : vector<16x32xf32>
    %26 = arith.addf %20, %25 : vector<16x32xf32>
    %c0_18 = arith.constant 0 : index
    %c0_19 = arith.constant 0 : index
    %27 = vector.load %arg5[%c0_18, %c0_19] : memref<1x32xf32, #tpu.memory_space<vmem>>, vector<1x32xf32>
    %28 = vector.broadcast %27 : vector<1x32xf32> to vector<16x32xf32>
    %29 = arith.addf %26, %28 : vector<16x32xf32>
    %cst_20 = arith.constant 0.000000e+00 : f32
    %30 = vector.broadcast %cst_20 : f32 to vector<16x32xf32>
    %31 = arith.maximumf %29, %30 : vector<16x32xf32>
    %c0_21 = arith.constant 0 : index
    %c0_22 = arith.constant 0 : index
    %32 = vector.load %arg7[%c0_21, %c0_22] : memref<2x16xf32, #tpu.memory_space<vmem>>, vector<2x16xf32>
    %cst_23 = arith.constant dense<0.000000e+00> : vector<2x32xf32>
    %33 = tpu.matmul %32, %31, %cst_23 {dimension_numbers = #tpu.dot_dimension_numbers<[1], [0], [0], [1], [0, 0, 1, 1], [], []>} : vector<2x16xf32>, vector<16x32xf32>, vector<2x32xf32> -> vector<2x32xf32>
    %c0_24 = arith.constant 0 : index
    %c0_25 = arith.constant 0 : index
    %34 = vector.load %arg8[%c0_24, %c0_25] : memref<2x32xf32, #tpu.memory_space<vmem>>, vector<2x32xf32>
    tpu.vector_store %arg8[%c0_24, %c0_25], %33 {strides = array<i32>} : memref<2x32xf32, #tpu.memory_space<vmem>>, vector<2x32xf32>,
    return
  }
  func.func @transform_0(%arg0: i32) -> (i32, i32) {
    %c0_i32 = arith.constant 0 : i32
    %c0_i32_0 = arith.constant 0 : i32
    return %arg0, %c0_i32 : i32, i32
  }
  func.func @transform_1(%arg0: i32) -> (i32, i32) {
    %c0_i32 = arith.constant 0 : i32
    %c0_i32_0 = arith.constant 0 : i32
    return %arg0, %c0_i32 : i32, i32
  }
  func.func @transform_2(%arg0: i32) -> (i32, i32) {
    %c0_i32 = arith.constant 0 : i32
    %c0_i32_0 = arith.constant 0 : i32
    return %arg0, %c0_i32 : i32, i32
  }
  func.func @transform_3(%arg0: i32) -> (i32, i32) {
    %c0_i32 = arith.constant 0 : i32
    %c0_i32_0 = arith.constant 0 : i32
    %c0_i32_1 = arith.constant 0 : i32
    return %c0_i32, %c0_i32_0 : i32, i32
  }
  func.func @transform_4(%arg0: i32) -> (i32, i32) {
    %c0_i32 = arith.constant 0 : i32
    %c0_i32_0 = arith.constant 0 : i32
    %c0_i32_1 = arith.constant 0 : i32
    return %c0_i32, %c0_i32_0 : i32, i32
  }
  func.func @transform_5(%arg0: i32) -> (i32, i32) {
    %c0_i32 = arith.constant 0 : i32
    %c0_i32_0 = arith.constant 0 : i32
    %c0_i32_1 = arith.constant 0 : i32
    return %c0_i32, %c0_i32_0 : i32, i32
  }
  func.func @transform_6(%arg0: i32) -> (i32, i32) {
    %c0_i32 = arith.constant 0 : i32
    %c0_i32_0 = arith.constant 0 : i32
    %c0_i32_1 = arith.constant 0 : i32
    return %c0_i32, %c0_i32_0 : i32, i32
  }
  func.func @transform_7(%arg0: i32) -> (i32, i32) {
    %c0_i32 = arith.constant 0 : i32
    %c0_i32_0 = arith.constant 0 : i32
    return %arg0, %c0_i32 : i32, i32
  }
}

</mosaic_0001>

<bundles_post_ra>
// kernel: tpu_custom_call.1
= control target key start
LH: loop header
LB: loop body
LE: loop exit
PB: predicated region body
PF: predicated region fallthrough
CT: control target
= control target key end

     0   :  { %s398_s30 = smov 16   ;;  %s399_s8 = smov 24   ;;  %vm29_vm0 = vcmask 130048   ;;  %v400_v8 = vmov 1   ;;  %s506_s0 = inlined_call_operand.vmem [shape: f32[16,16], index: 0, kind: input, shape index: {}]   ;;  %s507_s1 = inlined_call_operand.vmem [shape: f32[16,8], index: 1, kind: input, shape index: {}]   ;;  %s508_s2 = inlined_call_operand.vmem [shape: f32[16,8], index: 2, kind: input, shape index: {}]   ;;  %s509_s3 = inlined_call_operand.vmem [shape: f32[32,96], index: 3, kind: input, shape index: {}]   ;;  %s510_s4 = inlined_call_operand.vmem [shape: f32[1,32], index: 4, kind: input, shape index: {}]   ;;  %s511_s5 = inlined_call_operand.vmem [shape: f32[16,3], index: 5, kind: input, shape index: {}]   ;;  %s512_s6 = inlined_call_operand.vmem [shape: f32[2,16], index: 6, kind: input, shape index: {}]   ;;  %s513_s7 = inlined_call_operand.hbm [shape: f32[2,32], index: 7, kind: output, shape index: {}]  }
   0x1   :  { %v32_v0 = vld [vmem:[%s507_s1] sm:$0xff]  ;;  %v33_v2 = vld [vmem:[%s507_s1 + $0x8] sm:$0xff]  ;;  %369 = vset.pattern.permute.xlu1 %v400_v8  ;;  %368 = vset.pattern.permute.xlu0 %v400_v8  ;;  %v62_v10 = vld [vmem:[%s509_s3 + $0x10] sm:$0xff] }
   0x2   :  { %v45_v1 = vld [vmem:[%s508_s2] sm:$0xff]  ;;  %36 = vrot.lane.b32.xlu0 %v32_v0, %s398_s30  ;;  %v46_v3 = vld [vmem:[%s508_s2 + $0x8] sm:$0xff]  ;;  %v63_v11 = vld [vmem:[%s509_s3 + $0x18] sm:$0xff] }
   0x3   :  { %49 = vrot.lane.b32.xlu1 %v45_v1, %s399_s8  ;;  %v27_v4 = vld [vmem:[%s506_s0] sm:$0xff]  ;;  %v28_v5 = vld [vmem:[%s506_s0 + $0x8] sm:$0xff]  ;;  %v350_v12 = vpack.c.bf16 %v63_v11, %v62_v10 }
   0x4   :  { %30 = vst.msk [vmem:[#allocation2] sm:$0xff] %vm29_vm0, %v27_v4  ;;  %v60_v6 = vld [vmem:[%s509_s3] sm:$0xff]  ;;  %v61_v7 = vld [vmem:[%s509_s3 + $0x8] sm:$0xff]  ;;  %31 = vst.msk [vmem:[#allocation2 + $0x8] sm:$0xff] %vm29_vm0, %v28_v5 }
   0x5   :  { %v346_v9 = vpack.c.bf16 %v61_v7, %v60_v6 }
   0x6   :  { %12 = vsyncpa [#allocation4], 0  ;;  %38 = vrot.lane.b32.xlu0 %v33_v2, %s398_s30  ;;  %v154_v13 = vld [vmem:[%s511_s5 + $0x8] sm:$0xff]  ;;  %v153_v14 = vld [vmem:[%s511_s5] sm:$0xff]  ;;  %v401_v15 = vmov 0   ;;  %v402_v16 = vmov 2   ;;  %v148_v23 = vlaneseq }
   0x7   :  { %51 = vrot.lane.b32.xlu1 %v46_v3, %s399_s8  ;;  %347 = vmatprep.subr.bf16.mxu0 %v346_v9  ;;  %vm42_vm1 = vcmask 195712   ;;  %vm55_vm2 = vcmask 261312   ;;  %vm64_vm3 = vcmask 261120   ;;  %v403_v24 = vmov 0.0|0.0   ;;  %s404_s3 = smov 64   ;;  %s407_s5 = smov 96  }
   0x8   :  { %349 = vmatpush3.bf16.msra.mxu0 %v346_v9  ;;  %354 = vmatprep.subr.bf16.mxu1 %v403_v24  ;;  %v149_v25 = vshrl.u32 %v148_v23, 7  ;;  %vm405_vm5 = vmmov 0   ;;  %v406_v36 = vmov 0.0   ;;  %v317_v55 = vld [vmem:[%s510_s4] ss:$0 sm:$0xff]  ;;  %s408_s28 = smov [#allocation3]  }
   0x9   :  { %351 = vmatprep.subr.bf16.mxu0 %v350_v12  ;;  %343 = vmatprep.mubr.msk.f32.mxu1 %vm405_vm5, %v406_v36  ;;  %v225_v63 = vld [vmem:[%s512_s6] sm:$0x3]  ;;  %s307_s29 = sshll.u32 %s408_s28, 4  ;;  %vm299_vm7 = vcmask 254976   ;;  %s308_s29 = int_to_ptr.vmem [resolvable:$true] %s307_s29 }
   0xa   :  { %170 = vperm.xlu0 %368, %v153_v14   ;;  %vm150_vm4 = vcmp.lt.s32.totalorder %v149_v25, 1  ;;  %vm199_vm6 = vcmp.lt.s32.totalorder %v149_v25, 7  ;;  %s374_s4 = scalar_lea.vmem %s308_s29, 32  ;;  %p379_p1 = scmp.lt.s32.totalorder %s308_s29, %s308_s29 }
   0xb   :  { %174 = vperm.xlu1 %369, %v154_v13   ;;  %p375_p0 = scmp.ne.s32.totalorder %s308_s29, %s374_s4  ;;  %p380_p2 = scmp.lt.s32.totalorder %s374_s4, %s374_s4 }
   0xc   :  { %353 = vmatpush3.bf16.msra.mxu0 %v350_v12 }
   0xd   :  { %p381_p3 = por %p380_p2, %p379_p1 }
   0xe   :  { %371 = vset.pattern.permute.xlu0 %v401_v15 }
   0xf   :  { %370 = vset.pattern.permute.xlu1 %v401_v15  ;;  %162 = vperm.xlu0 %371, %v154_v13   ;;  %p382_p4 = pnand %p381_p3, %p375_p0 }
  0x10   :  { %157 = vperm.xlu1 %370, %v153_v14  }
  0x13   :  { %373 = vset.pattern.permute.xlu0 %v402_v16 }
  0x14   :  { %372 = vset.pattern.permute.xlu1 %v402_v16 }
  0x15   :  { %203 = vperm.xlu1 %372, %v153_v14  }
  0x19   :  { %207 = vperm.xlu1 %372, %v154_v13  }
  0x74   :  { %v37_v17 = vpop.permute.xlu0 %36 }
  0x75   :  { %v50_v18 = vpop.permute.xlu1 %49  ;;  %43 = vst.msk [vmem:[#allocation2] sm:$0xff] %vm42_vm1, %v37_v17 }
  0x76   :  { %56 = vst.msk [vmem:[#allocation2] sm:$0xff] %vm55_vm2, %v50_v18 }
  0x78   :  { %v39_v19 = vpop.permute.xlu0 %38 }
  0x79   :  { %v52_v20 = vpop.permute.xlu1 %51  ;;  %44 = vst.msk [vmem:[#allocation2 + $0x8] sm:$0xff] %vm42_vm1, %v39_v19 }
  0x7a   :  { %57 = vst.msk [vmem:[#allocation2 + $0x8] sm:$0xff] %vm55_vm2, %v52_v20 }
  0x7d   :  { %v58_v21 = vld [vmem:[#allocation2] sm:$0xff] }
  0x7e   :  { %336 = vmatprep.mubr.msk.f32.mxu0 %vm64_vm3, %v58_v21 }
  0x81   :  { %v59_v22 = vld [vmem:[#allocation2 + $0x8] sm:$0xff] }
  0x82   :  { %337 = vmatmul.mubr.msk.f32.vlgmr.msra.gmra.mrb[0].mxu0 %vm64_vm3, %v59_v22 }
  0x89   :  { %v171_v28 = vpop.permute.xlu0 %170 }
  0x8a   :  { %v175_v26 = vpop.permute.xlu1 %174 }
  0x8e   :  { %v163_v40 = vpop.permute.xlu0 %162 }
  0x8f   :  { %v158_v37 = vpop.permute.xlu1 %157 }
  0x94   :  { %v204_v38 = vpop.permute.xlu1 %203 }
  0x98   :  { %v208_v39 = vpop.permute.xlu1 %207 }
 0x155   :  { %v338_v27 = vpop.f32.mrb[0].mxu0 }
 0x156   :  { %v147_v29 = vrot.slane %v338_v27, 7  ;;  %193 = vrot.lane.b32.xlu1 %v338_v27, %s404_s3  ;;  %v137_v30 = vpop.f32.mrb[1].mxu0  ;;  %v178_v32 = vmul.f32 %v338_v27, %v175_v26 }
 0x157   :  { %v146_v31 = vrot.slane %v137_v30, 7  ;;  %191 = vrot.lane.b32.xlu0 %v137_v30, %s404_s3  ;;  %v177_v33 = vmul.f32 %v171_v28, %v137_v30 }
 0x159   :  { %v152_v34 = vsel %vm150_vm4, %v147_v29, %v146_v31  ;;  %v151_v35 = vsel %vm150_vm4, %v146_v31, %v147_v29 }
 0x15a   :  { %183 = vrot.lane.b32.xlu1 %v178_v32, %s407_s5  ;;  %v166_v45 = vmul.f32 %v163_v40, %v151_v35  ;;  %v165_v46 = vmul.f32 %v158_v37, %v152_v34 }
 0x15b   :  { %181 = vrot.lane.b32.xlu0 %v177_v33, %s407_s5 }
 0x1c8   :  { %v194_v41 = vpop.permute.xlu1 %193 }
 0x1c9   :  { %v198_v42 = vrot.slane %v194_v41, 1  ;;  %v192_v43 = vpop.permute.xlu0 %191 }
 0x1ca   :  { %v197_v44 = vrot.slane %v192_v43, 1 }
 0x1cc   :  { %v200_v47 = vsel %vm199_vm6, %v197_v44, %v198_v42  ;;  %v201_v48 = vsel %vm199_vm6, %v198_v42, %v197_v44  ;;  %v184_v49 = vpop.permute.xlu1 %183 }
 0x1cd   :  { %v188_v50 = vadd.f32 %v184_v49, %v166_v45  ;;  %v211_v51 = vmul.f32 %v208_v39, %v201_v48  ;;  %v210_v52 = vmul.f32 %v204_v38, %v200_v47  ;;  %v182_v53 = vpop.permute.xlu0 %181 }
 0x1ce   :  { %v187_v54 = vadd.f32 %v182_v53, %v165_v46 }
 0x1cf   :  { %v213_v56 = vadd.f32 %v211_v51, %v188_v50 }
 0x1d0   :  { %v212_v57 = vadd.f32 %v210_v52, %v187_v54 }
 0x1d1   :  { %v222_v58 = vadd.f32 %v317_v55, %v213_v56 }
 0x1d2   :  { %v221_v59 = vadd.f32 %v317_v55, %v212_v57 }
 0x1d3   :  { %v224_v60 = vmax.f32 %v222_v58, 0.0 }
 0x1d4   :  { %v223_v61 = vmax.f32 %v221_v59, 0.0 }
 0x1d6   :  { %v355_v62 = vpack.c.bf16 %v224_v60, %v223_v61 }
 0x1d8   :  { %356 = vmatpush3.bf16.msra.mxu1 %v355_v62 }
 0x1db   :  { %344 = vmatmul.mubr.msk.f32.vlgmr.msra.gmra.mrb[0].mxu1 %vm29_vm0, %v225_v63 }
 0x2ae   :  { %v295_v0 = vpop.f32.mrb[0].mxu1 }
 0x2af   :  { %300 = vst.msk [vmem:[#allocation3] sm:$0x3] %vm299_vm7, %v295_v0  ;;  %v345_v1 = vpop.f32.mrb[1].mxu1 }
 0x2b0   :  { %385 = shalt.err (!%p382_p4)
}
 0x2b1   :  { %s386_s6 = scalar_lea.hbm %s513_s7, 32 }
 0x2b2   :  { %p387_p5 = scmp.ne.s32.totalorder %s513_s7, %s386_s6  ;;  %p390_p6 = scmp.lt.u32.totalorder %s386_s6, %s513_s7 }
 0x2b4   :  { %p392_p7 = pnand %p390_p6, %p387_p5 }
 0x2b6   :  { %395 = shalt.err (!%p392_p7)
}
 0x2b7   :  { %310 = dma.vmem_to_hbm [thread:$0]  %s308_s29, 32, %s513_s7, [#allocation4]  }
 0x2b8   :  { %396 = dma.done.wait [#allocation4], 32  }
 0x2b9   :  { %397 = vsyncadd [#allocation4], 4294967264 }
 0x2ba   :  { %314 = vsyncpa [#allocation4], 1 }

</bundles_post_ra>
